<compile_context>
chip_gen: v7x
topology: tpu7x:2x2x1
jax: 0.10.0
libtpu: 0.0.40
codegen_flags: <defaults>
</compile_context>

<pallas_src>
import functools

import jax
import jax.numpy as jnp
from jax import lax
from jax.experimental import pallas as pl
from jax.experimental.pallas import tpu as pltpu

_LANE = 128


def _round_up(x, m):
    return ((x + m - 1) // m) * m


def _pick_tk(k, max_tk=1024):
    """Largest reduction tile <= max_tk that divides K (falls back to full K)."""
    if k <= max_tk:
        return k
    for tk in (max_tk, 768, 512, 384, 256, 128):
        if k % tk == 0:
            return tk
    return k  # TODO(synk): ragged K would need a masked / Element tail block.


def _tiling(mp, k_dim):
    tm = 256 if mp % 256 == 0 else 128
    return tm, _pick_tk(k_dim)


def _pad_rows(f, mp):
    m = f.shape[0]
    return f if m == mp else jnp.pad(f, ((0, mp - m), (0, 0)))


def _vmem_limit_bytes(*block_nbytes):
    # ~2x for double buffering plus headroom; floor at the default scoped
    # limit, cap at v7x physical VMEM.
    need = 3 * sum(int(b) for b in block_nbytes)
    return int(min(max(need, 32 * 1024 * 1024), 64 * 1024 * 1024))


# ---------------------------------------------------------------------------
# Kernels
# ---------------------------------------------------------------------------

def _gram_kernel(lhs_ref, rhs_ref, g_ref, *, inv_norm):
    """Accumulate G = (F @ F^T) * inv_norm.  Grid: (M row blocks, K tiles)."""
    k = pl.program_id(1)

    @pl.when(k == 0)
    def _():
        g_ref[...] = jnp.zeros_like(g_ref)

    # Contract axis 1 of both operands == F_block @ F^T, no explicit transpose.
    g_ref[...] += lax.dot_general(
        lhs_ref[...], rhs_ref[...],
        dimension_numbers=(((1,), (1,)), ((), ())),
        preferred_element_type=jnp.float32,
    )

    @pl.when(k == pl.num_programs(1) - 1)
    def _():
        g_ref[...] *= inv_norm


def _style_loss_kernel(lhs_ref, rhs_ref, tgt_ref, part_ref, acc_ref, *, inv_norm):
    """Loss-only variant: never writes the Gram back to HBM.

    Emits, per M-row block, the partial sum of squared errors replicated over
    one (8, 128) lane-dense tile (reduced + normalized in the wrapper).
    """
    k = pl.program_id(1)

    @pl.when(k == 0)
    def _():
        acc_ref[...] = jnp.zeros_like(acc_ref)

    acc_ref[...] += lax.dot_general(
        lhs_ref[...], rhs_ref[...],
        dimension_numbers=(((1,), (1,)), ((), ())),
        preferred_element_type=jnp.float32,
    )

    @pl.when(k == pl.num_programs(1) - 1)
    def _():
        diff = acc_ref[...] * inv_norm - tgt_ref[...]
        part = jnp.sum(diff * diff)
        part_ref[...] = jnp.full(part_ref.shape, part, dtype=part_ref.dtype)


# ---------------------------------------------------------------------------
# Wrappers
# ---------------------------------------------------------------------------

def gram_matrix_pallas(x):
    """Pallas equivalent of gram_matrix(input) for NCHW input x."""
    n, c, h, w = x.shape
    m, k_dim = n * c, h * w
    mp = _round_up(max(m, _LANE), _LANE)
    feats = _pad_rows(x.reshape(m, k_dim), mp)
    tm, tk = _tiling(mp, k_dim)
    inv_norm = 1.0 / float(n * c * h * w)
    itm = feats.dtype.itemsize

    g = pl.pallas_call(
        functools.partial(_gram_kernel, inv_norm=inv_norm),
        out_shape=jax.ShapeDtypeStruct((mp, mp), jnp.float32),
        grid_spec=pltpu.PrefetchScalarGridSpec(
            num_scalar_prefetch=0,
            grid=(mp // tm, k_dim // tk),
            in_specs=[
                pl.BlockSpec((tm, tk), lambda i, kk: (i, kk)),   # row block of F
                pl.BlockSpec((mp, tk), lambda i, kk: (0, kk)),   # all rows of F
            ],
            out_specs=pl.BlockSpec((tm, mp), lambda i, kk: (i, 0)),
        ),
        compiler_params=pltpu.CompilerParams(
            dimension_semantics=("parallel", "arbitrary"),
            vmem_limit_bytes=_vmem_limit_bytes(
                tm * tk * itm, mp * tk * itm, tm * mp * 4),
        ),
    )(feats, feats)
    return g[:m, :m]


def style_loss_init_target(style_imgs):
    """Mirrors StyleLoss.after_init: mean over style images of gram_matrix(feature)."""
    # TODO(synk): the original applies a trained CNN feature extractor (`model`);
    # here the feature map is the (synthetic) image itself.
    grams = [gram_matrix_pallas(img) for img in style_imgs]
    return sum(grams) / float(len(style_imgs))


def style_loss_forward(x, target):
    """StyleLoss.forward: returns the input unchanged and the MSE style loss."""
    n, c, h, w = x.shape
    m, k_dim = n * c, h * w
    assert target.shape == (m, m)
    mp = _round_up(max(m, _LANE), _LANE)
    feats = _pad_rows(x.reshape(m, k_dim), mp)
    tgt = jnp.pad(target.astype(jnp.float32), ((0, mp - m), (0, mp - m)))
    tm, tk = _tiling(mp, k_dim)
    inv_norm = 1.0 / float(n * c * h * w)
    itm = feats.dtype.itemsize
    n_row_blocks = mp // tm

    partials = pl.pallas_call(
        functools.partial(_style_loss_kernel, inv_norm=inv_norm),
        out_shape=jax.ShapeDtypeStruct((n_row_blocks, 8, _LANE), jnp.float32),
        grid_spec=pltpu.PrefetchScalarGridSpec(
            num_scalar_prefetch=0,
            grid=(n_row_blocks, k_dim // tk),
            in_specs=[
                pl.BlockSpec((tm, tk), lambda i, kk: (i, kk)),   # row block of F
                pl.BlockSpec((mp, tk), lambda i, kk: (0, kk)),   # all rows of F
                pl.BlockSpec((tm, mp), lambda i, kk: (i, 0)),    # target row block
            ],
            out_specs=pl.BlockSpec((1, 8, _LANE), lambda i, kk: (i, 0, 0)),
            scratch_shapes=[pltpu.VMEM((tm, mp), jnp.float32)],
        ),
        compiler_params=pltpu.CompilerParams(
            dimension_semantics=("parallel", "arbitrary"),
            vmem_limit_bytes=_vmem_limit_bytes(
                tm * tk * itm, mp * tk * itm, tm * mp * 4, tm * mp * 4),
        ),
    )(feats, feats, tgt)

    # Padded rows/cols contribute zero squared error; divide by the true number
    # of Gram entries to match F.mse_loss(..., reduction='mean').
    loss = jnp.sum(partials[:, 0, 0]) / float(m * m)
    return x, loss


# ---------------------------------------------------------------------------
# Plain-JAX reference + self-test
# ---------------------------------------------------------------------------

def _reference_gram(x):
    n, c, h, w = x.shape
    f = x.reshape(n * c, h * w).astype(jnp.float32)
    return (f @ f.T) / (n * c * h * w)


def _reference_loss(x, target):
    g = _reference_gram(x)
    return jnp.mean((g - target) ** 2)


if __name__ == "__main__":
    key = jax.random.PRNGKey(0)
    k_style0, k_style1, k_in = jax.random.split(key, 3)

    N, C, H, W = 2, 4, 16, 16  # small NCHW feature-map shape

    # Deterministic synthetic "style feature maps" (identity model).
    style_imgs = [
        jax.random.normal(k_style0, (N, C, H, W), jnp.float32),
        jax.random.normal(k_style1, (N, C, H, W), jnp.float32),
    ]
    target = style_loss_init_target(style_imgs)  # (N*C, N*C)

    x = jax.random.normal(k_in, (N, C, H, W), jnp.float32)

    # Gram-matrix check (init path).
    g = jax.block_until_ready(gram_matrix_pallas(x))
    ref_g = _reference_gram(x)
    assert g.shape == ref_g.shape
    assert jnp.allclose(g, ref_g, rtol=1e-5, atol=1e-5), "gram mismatch"

    # Forward (loss-only) check.
    out, loss = style_loss_forward(x, target)
    out = jax.block_until_ready(out)
    loss = jax.block_until_ready(loss)

    ref_loss = _reference_loss(x, target)
    assert out.shape == x.shape and jnp.allclose(out, x), "input passthrough failed"
    assert jnp.allclose(loss, ref_loss, rtol=1e-5, atol=1e-6), (loss, ref_loss)

    print("KERNEL_OK")
</pallas_src>

<mosaic_0001>
module attributes {stable_mosaic.version = 11 : i64} {
  func.func @_gram_kernel(%arg0: i32, %arg1: i32, %arg2: memref<128x256xf32, #tpu.memory_space<vmem>>, %arg3: memref<128x256xf32, #tpu.memory_space<vmem>>, %arg4: memref<128x128xf32, #tpu.memory_space<vmem>>) attributes {dimension_semantics = [#tpu.dimension_semantics<parallel>, #tpu.dimension_semantics<arbitrary>], iteration_bounds = array<i64: 1, 1>, scalar_prefetch = 0 : i64, scratch_operands = 0 : i64, tpu.core_type = #tpu.core_type<tc>, window_params = [{transform_indices = @transform_0, window_bounds = array<i64: 128, 256>}, {transform_indices = @transform_1, window_bounds = array<i64: 128, 256>}, {transform_indices = @transform_2, window_bounds = array<i64: 128, 128>}]} {
    %c0_i32 = arith.constant 0 : i32
    %0 = arith.cmpi eq, %arg1, %c0_i32 : i32
    %1 = arith.extui %0 : i1 to i32
    %c0_i32_0 = arith.constant 0 : i32
    %2 = arith.cmpi ne, %1, %c0_i32_0 : i32
    scf.if %2 {
      %cst_10 = arith.constant 0.000000e+00 : f32
      %12 = vector.broadcast %cst_10 : f32 to vector<128x128xf32>
      %c0_11 = arith.constant 0 : index
      %c0_12 = arith.constant 0 : index
      %13 = vector.load %arg4[%c0_11, %c0_12] : memref<128x128xf32, #tpu.memory_space<vmem>>, vector<128x128xf32>
      tpu.vector_store %arg4[%c0_11, %c0_12], %12 {strides = array<i32>} : memref<128x128xf32, #tpu.memory_space<vmem>>, vector<128x128xf32>,
    } else {
    }
    %c0 = arith.constant 0 : index
    %c0_1 = arith.constant 0 : index
    %3 = vector.load %arg4[%c0, %c0_1] : memref<128x128xf32, #tpu.memory_space<vmem>>, vector<128x128xf32>
    %c0_2 = arith.constant 0 : index
    %c0_3 = arith.constant 0 : index
    %4 = vector.load %arg2[%c0_2, %c0_3] : memref<128x256xf32, #tpu.memory_space<vmem>>, vector<128x256xf32>
    %c0_4 = arith.constant 0 : index
    %c0_5 = arith.constant 0 : index
    %5 = vector.load %arg3[%c0_4, %c0_5] : memref<128x256xf32, #tpu.memory_space<vmem>>, vector<128x256xf32>
    %cst = arith.constant dense<0.000000e+00> : vector<128x128xf32>
    %6 = tpu.matmul %4, %5, %cst {dimension_numbers = #tpu.dot_dimension_numbers<[1], [1], [0], [0], [0, 0, 1, 0], [], []>} : vector<128x256xf32>, vector<128x256xf32>, vector<128x128xf32> -> vector<128x128xf32>
    %7 = arith.addf %3, %6 : vector<128x128xf32>
    %c0_6 = arith.constant 0 : index
    %c0_7 = arith.constant 0 : index
    %8 = vector.load %arg4[%c0_6, %c0_7] : memref<128x128xf32, #tpu.memory_space<vmem>>, vector<128x128xf32>
    tpu.vector_store %arg4[%c0_6, %c0_7], %7 {strides = array<i32>} : memref<128x128xf32, #tpu.memory_space<vmem>>, vector<128x128xf32>,
    %c0_i32_8 = arith.constant 0 : i32
    %9 = arith.cmpi eq, %arg1, %c0_i32_8 : i32
    %10 = arith.extui %9 : i1 to i32
    %c0_i32_9 = arith.constant 0 : i32
    %11 = arith.cmpi ne, %10, %c0_i32_9 : i32
    scf.if %11 {
      %c0_10 = arith.constant 0 : index
      %c0_11 = arith.constant 0 : index
      %12 = vector.load %arg4[%c0_10, %c0_11] : memref<128x128xf32, #tpu.memory_space<vmem>>, vector<128x128xf32>
      %cst_12 = arith.constant 4.8828125E-4 : f32
      %13 = vector.broadcast %cst_12 : f32 to vector<128x128xf32>
      %14 = arith.mulf %12, %13 : vector<128x128xf32>
      %c0_13 = arith.constant 0 : index
      %c0_14 = arith.constant 0 : index
      %15 = vector.load %arg4[%c0_13, %c0_14] : memref<128x128xf32, #tpu.memory_space<vmem>>, vector<128x128xf32>
      tpu.vector_store %arg4[%c0_13, %c0_14], %14 {strides = array<i32>} : memref<128x128xf32, #tpu.memory_space<vmem>>, vector<128x128xf32>,
    } else {
    }
    return
  }
  func.func @transform_0(%arg0: i32, %arg1: i32) -> (i32, i32) {
    %c0_i32 = arith.constant 0 : i32
    return %arg0, %arg1 : i32, i32
  }
  func.func @transform_1(%arg0: i32, %arg1: i32) -> (i32, i32) {
    %c0_i32 = arith.constant 0 : i32
    %c0_i32_0 = arith.constant 0 : i32
    return %c0_i32, %arg1 : i32, i32
  }
  func.func @transform_2(%arg0: i32, %arg1: i32) -> (i32, i32) {
    %c0_i32 = arith.constant 0 : i32
    %c0_i32_0 = arith.constant 0 : i32
    return %arg0, %c0_i32 : i32, i32
  }
}

</mosaic_0001>

<bundles_post_ra>
// kernel: tpu_custom_call.1
= control target key start
LH: loop header
LB: loop body
LE: loop exit
PB: predicated region body
PF: predicated region fallthrough
CT: control target
= control target key end

     0   :  { %7 = vsyncpa [#allocation3], 0  ;;  %s572_s0 = inlined_call_operand.hbm [shape: f32[128,256], index: 0, kind: input, shape index: {}]   ;;  %s573_s1 = inlined_call_operand.hbm [shape: f32[128,256], index: 1, kind: input, shape index: {}]   ;;  %s574_s2 = inlined_call_operand.hbm [shape: f32[128,128], index: 2, kind: output, shape index: {}]  }
   0x1   :  { %8 = vsyncpa [#allocation6], 0 }
   0x2   :  { %9 = vsyncpa [#allocation4], 0  ;;  %s514_s9 = smov [#allocation2]   ;;  %s442_s13 = scalar_lea.hbm %s572_s0, 4096 }
   0x3   :  { %s15_s10 = sshll.u32 %s514_s9, 4  ;;  %p443_p0 = scmp.ne.s32.totalorder %s572_s0, %s442_s13  ;;  %s16_s10 = int_to_ptr.vmem [resolvable:$true] %s15_s10 }
   0x4   :  { %p446_p1 = scmp.lt.u32.totalorder %s442_s13, %s572_s0 }
   0x6   :  { %p448_p2 = pnand %p446_p1, %p443_p0 }
   0x8   :  { %451 = shalt.err (!%p448_p2)
}
   0x9   :  { %s452_s18 = scalar_lea.vmem %s16_s10, 4096  ;;  %p457_p4 = scmp.lt.s32.totalorder %s16_s10, %s16_s10 }
   0xa   :  { %p453_p3 = scmp.ne.s32.totalorder %s16_s10, %s452_s18  ;;  %p458_p5 = scmp.lt.s32.totalorder %s452_s18, %s452_s18 }
   0xc   :  { %p459_p6 = por %p458_p5, %p457_p4 }
   0xe   :  { %p460_p7 = pnand %p459_p6, %p453_p3 }
  0x10   :  { %463 = shalt.err (!%p460_p7)
}
  0x11   :  { %s515_s19 = smov 256   ;;  %s516_s20 = smov 16  }
  0x12   :  { %21 = dma.hbm_to_vmem [thread:$0]  %s572_s0, 4096, %s16_s10, [#allocation3], %s515_s19, %s515_s19, %s516_s20  }
  0x13   :  { %s517_s23 = smov [#allocation5]   ;;  %s464_s27 = scalar_lea.hbm %s573_s1, 4096 }
  0x14   :  { %s27_s24 = sshll.u32 %s517_s23, 4  ;;  %p465_p8 = scmp.ne.s32.totalorder %s573_s1, %s464_s27  ;;  %s28_s24 = int_to_ptr.vmem [resolvable:$true] %s27_s24 }
  0x15   :  { %p468_p9 = scmp.lt.u32.totalorder %s464_s27, %s573_s1 }
  0x17   :  { %p470_p10 = pnand %p468_p9, %p465_p8 }
  0x19   :  { %473 = shalt.err (!%p470_p10)
}
  0x1a   :  { %s474_s4 = scalar_lea.vmem %s28_s24, 4096  ;;  %p479_p12 = scmp.lt.s32.totalorder %s28_s24, %s28_s24 }
  0x1b   :  { %p475_p11 = scmp.ne.s32.totalorder %s28_s24, %s474_s4  ;;  %p480_p13 = scmp.lt.s32.totalorder %s474_s4, %s474_s4 }
  0x1d   :  { %p481_p0 = por %p480_p13, %p479_p12 }
  0x1f   :  { %p482_p1 = pnand %p481_p0, %p475_p11 }
  0x21   :  { %485 = shalt.err (!%p482_p1)
}
  0x22   :  { %33 = dma.hbm_to_vmem [thread:$0]  %s573_s1, 4096, %s28_s24, [#allocation6], %s515_s19, %s515_s19, %s516_s20  }
  0x23   :  { %508 = dma.done.wait [#allocation3], 4096  }
  0x24   :  { %509 = vsyncadd [#allocation3], 4294963200 }
  0x25   :  { %510 = dma.done.wait [#allocation6], 4096  }
  0x26   :  { %511 = vsyncadd [#allocation6], 4294963200  ;;  %v109_v0 = vld [vmem:[#allocation5 + $0x8] sm:$0xff]  ;;  %v111_v1 = vld [vmem:[#allocation5 + $0x18] sm:$0xff]  ;;  %s518_s1 = smov [#allocation7]  }
  0x27   :  { %v108_v2 = vld [vmem:[#allocation5] sm:$0xff]  ;;  %v386_v3 = vpack.c.bf16 %v111_v1, %v109_v0  ;;  %v110_v4 = vld [vmem:[#allocation5 + $0x10] sm:$0xff]  ;;  %v113_v5 = vld [vmem:[#allocation5 + $0x28] sm:$0xff]  ;;  %s373_s6 = sshll.u32 %s518_s1, 4  ;;  %s374_s6 = int_to_ptr.vmem [resolvable:$true] %s373_s6 }
  0x28   :  { %v115_v6 = vld [vmem:[#allocation5 + $0x38] sm:$0xff]  ;;  %v388_v7 = vpack.c.bf16 %v110_v4, %v108_v2  ;;  %v112_v9 = vld [vmem:[#allocation5 + $0x20] sm:$0xff]  ;;  %v114_v10 = vld [vmem:[#allocation5 + $0x30] sm:$0xff]  ;;  %s486_s7 = scalar_lea.vmem %s374_s6, 2048  ;;  %p491_p3 = scmp.lt.s32.totalorder %s374_s6, %s374_s6 }
  0x29   :  { %v390_v8 = vpack.c.bf16 %v115_v6, %v113_v5  ;;  %387 = vmatprep.subr.bf16.mxu0 %v386_v3  ;;  %418 = vmatprep.subr.bf16.mxu1 %v386_v3  ;;  %v117_v11 = vld [vmem:[#allocation5 + $0x48] sm:$0xff]  ;;  %v119_v12 = vld [vmem:[#allocation5 + $0x58] sm:$0xff]  ;;  %v392_v13 = vpack.c.bf16 %v114_v10, %v112_v9  ;;  %v116_v17 = vld [vmem:[#allocation5 + $0x40] sm:$0xff]  ;;  %p487_p2 = scmp.ne.s32.totalorder %s374_s6, %s486_s7  ;;  %p492_p4 = scmp.lt.s32.totalorder %s486_s7, %s486_s7 }
  0x2a   :  { %389 = vmatpush1.bf16.xpose.msra.mxu0 %v388_v7  ;;  %426 = vmatpush1.bf16.xpose.msra.mxu1 %v388_v7  ;;  %v394_v14 = vpack.c.bf16 %v119_v12, %v117_v11  ;;  %v77_v15 = vld [vmem:[#allocation2 + $0x8] sm:$0xff]  ;;  %v118_v18 = vld [vmem:[#allocation5 + $0x50] sm:$0xff]  ;;  %v123_v20 = vld [vmem:[#allocation5 + $0x78] sm:$0xff] }
  0x2b   :  { %391 = vmatprep.subr.bf16.mxu0 %v390_v8  ;;  %419 = vmatprep.subr.bf16.mxu1 %v390_v8  ;;  %v93_v16 = vld [vmem:[#allocation2 + $0x88] sm:$0xff]  ;;  %v396_v21 = vpack.c.bf16 %v118_v18, %v116_v17  ;;  %v120_v23 = vld [vmem:[#allocation5 + $0x60] sm:$0xff]  ;;  %v122_v24 = vld [vmem:[#allocation5 + $0x70] sm:$0xff]  ;;  %p493_p5 = por %p492_p4, %p491_p3 }
  0x2c   :  { %204 = vmatprep.mubr.f32.mxu0 %v77_v15  ;;  %v121_v19 = vld [vmem:[#allocation5 + $0x68] sm:$0xff]  ;;  %244 = vmatprep.mubr.f32.mxu1 %v93_v16  ;;  %v127_v26 = vld [vmem:[#allocation5 + $0x98] sm:$0xff]  ;;  %v400_v27 = vpack.c.bf16 %v122_v24, %v120_v23  ;;  %v124_v29 = vld [vmem:[#allocation5 + $0x80] sm:$0xff] }
  0x2d   :  { %v398_v22 = vpack.c.bf16 %v123_v20, %v121_v19  ;;  %v125_v25 = vld [vmem:[#allocation5 + $0x88] sm:$0xff]  ;;  %v126_v30 = vld [vmem:[#allocation5 + $0x90] sm:$0xff]  ;;  %v131_v32 = vld [vmem:[#allocation5 + $0xb8] sm:$0xff]  ;;  %p494_p6 = pnand %p493_p5, %p487_p2 }
  0x2e   :  { %v402_v28 = vpack.c.bf16 %v127_v26, %v125_v25  ;;  %v129_v31 = vld [vmem:[#allocation5 + $0xa8] sm:$0xff]  ;;  %v404_v33 = vpack.c.bf16 %v126_v30, %v124_v29  ;;  %v128_v35 = vld [vmem:[#allocation5 + $0xa0] sm:$0xff]  ;;  %v130_v36 = vld [vmem:[#allocation5 + $0xb0] sm:$0xff] }
  0x2f   :  { %v406_v34 = vpack.c.bf16 %v131_v32, %v129_v31  ;;  %v133_v37 = vld [vmem:[#allocation5 + $0xc8] sm:$0xff]  ;;  %v135_v38 = vld [vmem:[#allocation5 + $0xd8] sm:$0xff]  ;;  %v408_v39 = vpack.c.bf16 %v130_v36, %v128_v35  ;;  %v132_v41 = vld [vmem:[#allocation5 + $0xc0] sm:$0xff] }
  0x30   :  { %v410_v40 = vpack.c.bf16 %v135_v38, %v133_v37  ;;  %v134_v42 = vld [vmem:[#allocation5 + $0xd0] sm:$0xff]  ;;  %v137_v43 = vld [vmem:[#allocation5 + $0xe8] sm:$0xff]  ;;  %v139_v44 = vld [vmem:[#allocation5 + $0xf8] sm:$0xff] }
  0x31   :  { %v412_v45 = vpack.c.bf16 %v134_v42, %v132_v41  ;;  %v414_v46 = vpack.c.bf16 %v139_v44, %v137_v43  ;;  %v136_v47 = vld [vmem:[#allocation5 + $0xe0] sm:$0xff]  ;;  %v138_v48 = vld [vmem:[#allocation5 + $0xf0] sm:$0xff]  ;;  %v79_v52 = vld [vmem:[#allocation2 + $0x18] sm:$0xff] }
  0x32   :  { %393 = vmatpush1.bf16.xpose.msra.mxu0 %v392_v13  ;;  %427 = vmatpush1.bf16.xpose.msra.mxu1 %v392_v13  ;;  %v416_v49 = vpack.c.bf16 %v138_v48, %v136_v47  ;;  %v76_v50 = vld [vmem:[#allocation2] sm:$0xff]  ;;  %v95_v53 = vld [vmem:[#allocation2 + $0x98] sm:$0xff]  ;;  %v78_v54 = vld [vmem:[#allocation2 + $0x10] sm:$0xff] }
  0x33   :  { %395 = vmatprep.subr.bf16.mxu0 %v394_v14  ;;  %420 = vmatprep.subr.bf16.mxu1 %v394_v14  ;;  %v92_v51 = vld [vmem:[#allocation2 + $0x80] sm:$0xff]  ;;  %v94_v55 = vld [vmem:[#allocation2 + $0x90] sm:$0xff]  ;;  %v81_v56 = vld [vmem:[#allocation2 + $0x28] sm:$0xff] }
  0x34   :  { %v97_v57 = vld [vmem:[#allocation2 + $0xa8] sm:$0xff]  ;;  %v80_v58 = vld [vmem:[#allocation2 + $0x20] sm:$0xff]  ;;  %v83_v60 = vld [vmem:[#allocation2 + $0x38] sm:$0xff] }
  0x35   :  { %v96_v59 = vld [vmem:[#allocation2 + $0xa0] sm:$0xff]  ;;  %v99_v61 = vld [vmem:[#allocation2 + $0xb8] sm:$0xff]  ;;  %v82_v62 = vld [vmem:[#allocation2 + $0x30] sm:$0xff] }
  0x36   :  { %v98_v63 = vld [vmem:[#allocation2 + $0xb0] sm:$0xff]  ;;  %v85_v0 = vld [vmem:[#allocation2 + $0x48] sm:$0xff]  ;;  %v84_v2 = vld [vmem:[#allocation2 + $0x40] sm:$0xff] }
  0x37   :  { %v101_v1 = vld [vmem:[#allocation2 + $0xc8] sm:$0xff]  ;;  %v100_v3 = vld [vmem:[#allocation2 + $0xc0] sm:$0xff]  ;;  %v87_v4 = vld [vmem:[#allocation2 + $0x58] sm:$0xff] }
  0x38   :  { %v103_v5 = vld [vmem:[#allocation2 + $0xd8] sm:$0xff]  ;;  %v86_v6 = vld [vmem:[#allocation2 + $0x50] sm:$0xff]  ;;  %v89_v8 = vld [vmem:[#allocation2 + $0x68] sm:$0xff] }
  0x39   :  { %v102_v7 = vld [vmem:[#allocation2 + $0xd0] sm:$0xff]  ;;  %v105_v9 = vld [vmem:[#allocation2 + $0xe8] sm:$0xff]  ;;  %v88_v10 = vld [vmem:[#allocation2 + $0x60] sm:$0xff] }
  0x3a   :  { %397 = vmatpush1.bf16.xpose.msra.mxu0 %v396_v21  ;;  %428 = vmatpush1.bf16.xpose.msra.mxu1 %v396_v21  ;;  %v104_v11 = vld [vmem:[#allocation2 + $0xe0] sm:$0xff]  ;;  %v91_v12 = vld [vmem:[#allocation2 + $0x78] sm:$0xff]  ;;  %v90_v14 = vld [vmem:[#allocation2 + $0x70] sm:$0xff] }
  0x3b   :  { %399 = vmatprep.subr.bf16.mxu0 %v398_v22  ;;  %421 = vmatprep.subr.bf16.mxu1 %v398_v22  ;;  %v107_v13 = vld [vmem:[#allocation2 + $0xf8] sm:$0xff]  ;;  %v106_v15 = vld [vmem:[#allocation2 + $0xf0] sm:$0xff] }
  0x42   :  { %401 = vmatpush1.bf16.xpose.msra.mxu0 %v400_v27  ;;  %429 = vmatpush1.bf16.xpose.msra.mxu1 %v400_v27 }
  0x43   :  { %403 = vmatprep.subr.bf16.mxu0 %v402_v28  ;;  %422 = vmatprep.subr.bf16.mxu1 %v402_v28 }
  0x4a   :  { %405 = vmatpush1.bf16.xpose.msra.mxu0 %v404_v33  ;;  %430 = vmatpush1.bf16.xpose.msra.mxu1 %v404_v33 }
  0x4b   :  { %407 = vmatprep.subr.bf16.mxu0 %v406_v34  ;;  %423 = vmatprep.subr.bf16.mxu1 %v406_v34 }
  0x52   :  { %409 = vmatpush1.bf16.xpose.msra.mxu0 %v408_v39  ;;  %431 = vmatpush1.bf16.xpose.msra.mxu1 %v408_v39 }
  0x53   :  { %411 = vmatprep.subr.bf16.mxu0 %v410_v40  ;;  %424 = vmatprep.subr.bf16.mxu1 %v410_v40 }
  0x5a   :  { %413 = vmatpush1.bf16.xpose.msra.mxu0 %v412_v45  ;;  %432 = vmatpush1.bf16.xpose.msra.mxu1 %v412_v45 }
  0x5b   :  { %415 = vmatprep.subr.bf16.mxu0 %v414_v46  ;;  %425 = vmatprep.subr.bf16.mxu1 %v414_v46 }
  0x62   :  { %417 = vmatpush1.bf16.xpose.msra.mxu0 %v416_v49  ;;  %433 = vmatpush1.bf16.xpose.msra.mxu1 %v416_v49 }
  0x69   :  { %205 = vmatmul.mubr.f32.vlgmr.msra.gmra.mrb[0].mxu0 %v76_v50  ;;  %245 = vmatmul.mubr.f32.vlgmr.msra.gmra.mrb[0].mxu1 %v92_v51 }
  0x6a   :  { %209 = vmatprep.mubr.f32.mxu0 %v79_v52  ;;  %249 = vmatprep.mubr.f32.mxu1 %v95_v53 }
  0x6d   :  { %210 = vmatmul.mubr.f32.gmra.mrb[2].mxu0 %v78_v54  ;;  %250 = vmatmul.mubr.f32.gmra.mrb[2].mxu1 %v94_v55 }
  0x6e   :  { %214 = vmatprep.mubr.f32.mxu0 %v81_v56  ;;  %254 = vmatprep.mubr.f32.mxu1 %v97_v57 }
  0x71   :  { %215 = vmatmul.mubr.f32.gmra.mrb[4].mxu0 %v80_v58  ;;  %255 = vmatmul.mubr.f32.gmra.mrb[4].mxu1 %v96_v59 }
  0x72   :  { %219 = vmatprep.mubr.f32.mxu0 %v83_v60  ;;  %259 = vmatprep.mubr.f32.mxu1 %v99_v61 }
  0x75   :  { %220 = vmatmul.mubr.f32.gmra.mrb[6].mxu0 %v82_v62  ;;  %260 = vmatmul.mubr.f32.gmra.mrb[6].mxu1 %v98_v63 }
  0x76   :  { %224 = vmatprep.mubr.f32.mxu0 %v85_v0  ;;  %264 = vmatprep.mubr.f32.mxu1 %v101_v1 }
  0x79   :  { %225 = vmatmul.mubr.f32.gmra.mrb[8].mxu0 %v84_v2  ;;  %265 = vmatmul.mubr.f32.gmra.mrb[8].mxu1 %v100_v3 }
  0x7a   :  { %229 = vmatprep.mubr.f32.mxu0 %v87_v4  ;;  %269 = vmatprep.mubr.f32.mxu1 %v103_v5 }
  0x7d   :  { %230 = vmatmul.mubr.f32.gmra.mrb[10].mxu0 %v86_v6  ;;  %270 = vmatmul.mubr.f32.gmra.mrb[10].mxu1 %v102_v7 }
  0x7e   :  { %234 = vmatprep.mubr.f32.mxu0 %v89_v8  ;;  %274 = vmatprep.mubr.f32.mxu1 %v105_v9 }
  0x81   :  { %235 = vmatmul.mubr.f32.gmra.mrb[12].mxu0 %v88_v10  ;;  %275 = vmatmul.mubr.f32.gmra.mrb[12].mxu1 %v104_v11 }
  0x82   :  { %239 = vmatprep.mubr.f32.mxu0 %v91_v12  ;;  %279 = vmatprep.mubr.f32.mxu1 %v107_v13 }
  0x85   :  { %240 = vmatmul.mubr.f32.gmra.mrb[14].mxu0 %v90_v14  ;;  %280 = vmatmul.mubr.f32.gmra.mrb[14].mxu1 %v106_v15 }
 0x13c   :  { %v206_v16 = vpop.f32.mrb[0].mxu0  ;;  %v246_v17 = vpop.f32.mrb[0].mxu1 }
 0x13d   :  { %v208_v18 = vpop.f32.mrb[1].mxu0  ;;  %v248_v19 = vpop.f32.mrb[1].mxu1  ;;  %v336_v20 = vmul.f32 0.00048828125, %v206_v16  ;;  %v344_v21 = vmul.f32 0.00048828125, %v246_v17 }
 0x13f   :  { %352 = vst [vmem:[#allocation7] sm:$0xff] %v336_v20  ;;  %360 = vst [vmem:[#allocation7 + $0x40] sm:$0xff] %v344_v21 }
 0x140   :  { %v211_v22 = vpop.f32.mrb[2].mxu0  ;;  %v251_v23 = vpop.f32.mrb[2].mxu1 }
 0x141   :  { %v213_v24 = vpop.f32.mrb[3].mxu0  ;;  %v253_v25 = vpop.f32.mrb[3].mxu1  ;;  %v337_v26 = vmul.f32 0.00048828125, %v211_v22  ;;  %v345_v27 = vmul.f32 0.00048828125, %v251_v23 }
 0x143   :  { %353 = vst [vmem:[#allocation7 + $0x8] sm:$0xff] %v337_v26  ;;  %361 = vst [vmem:[#allocation7 + $0x48] sm:$0xff] %v345_v27 }
 0x144   :  { %v216_v28 = vpop.f32.mrb[4].mxu0  ;;  %v256_v29 = vpop.f32.mrb[4].mxu1 }
 0x145   :  { %v218_v30 = vpop.f32.mrb[5].mxu0  ;;  %v258_v31 = vpop.f32.mrb[5].mxu1  ;;  %v338_v32 = vmul.f32 0.00048828125, %v216_v28  ;;  %v346_v33 = vmul.f32 0.00048828125, %v256_v29 }
 0x147   :  { %354 = vst [vmem:[#allocation7 + $0x10] sm:$0xff] %v338_v32  ;;  %362 = vst [vmem:[#allocation7 + $0x50] sm:$0xff] %v346_v33 }
 0x148   :  { %v221_v34 = vpop.f32.mrb[6].mxu0  ;;  %v261_v35 = vpop.f32.mrb[6].mxu1 }
 0x149   :  { %v223_v36 = vpop.f32.mrb[7].mxu0  ;;  %v263_v37 = vpop.f32.mrb[7].mxu1  ;;  %v339_v38 = vmul.f32 0.00048828125, %v221_v34  ;;  %v347_v39 = vmul.f32 0.00048828125, %v261_v35 }
 0x14b   :  { %355 = vst [vmem:[#allocation7 + $0x18] sm:$0xff] %v339_v38  ;;  %363 = vst [vmem:[#allocation7 + $0x58] sm:$0xff] %v347_v39 }
 0x14c   :  { %v226_v40 = vpop.f32.mrb[8].mxu0  ;;  %v266_v41 = vpop.f32.mrb[8].mxu1 }
 0x14d   :  { %v228_v42 = vpop.f32.mrb[9].mxu0  ;;  %v268_v43 = vpop.f32.mrb[9].mxu1  ;;  %v340_v44 = vmul.f32 0.00048828125, %v226_v40  ;;  %v348_v45 = vmul.f32 0.00048828125, %v266_v41 }
 0x14f   :  { %356 = vst [vmem:[#allocation7 + $0x20] sm:$0xff] %v340_v44  ;;  %364 = vst [vmem:[#allocation7 + $0x60] sm:$0xff] %v348_v45 }
 0x150   :  { %v231_v46 = vpop.f32.mrb[10].mxu0  ;;  %v271_v47 = vpop.f32.mrb[10].mxu1 }
 0x151   :  { %v233_v48 = vpop.f32.mrb[11].mxu0  ;;  %v273_v49 = vpop.f32.mrb[11].mxu1  ;;  %v341_v50 = vmul.f32 0.00048828125, %v231_v46  ;;  %v349_v51 = vmul.f32 0.00048828125, %v271_v47 }
 0x153   :  { %357 = vst [vmem:[#allocation7 + $0x28] sm:$0xff] %v341_v50  ;;  %365 = vst [vmem:[#allocation7 + $0x68] sm:$0xff] %v349_v51 }
 0x154   :  { %v236_v52 = vpop.f32.mrb[12].mxu0  ;;  %v276_v53 = vpop.f32.mrb[12].mxu1 }
 0x155   :  { %v238_v54 = vpop.f32.mrb[13].mxu0  ;;  %v278_v55 = vpop.f32.mrb[13].mxu1  ;;  %v342_v56 = vmul.f32 0.00048828125, %v236_v52  ;;  %v350_v57 = vmul.f32 0.00048828125, %v276_v53 }
 0x157   :  { %358 = vst [vmem:[#allocation7 + $0x30] sm:$0xff] %v342_v56  ;;  %366 = vst [vmem:[#allocation7 + $0x70] sm:$0xff] %v350_v57 }
 0x158   :  { %v241_v58 = vpop.f32.mrb[14].mxu0  ;;  %v281_v59 = vpop.f32.mrb[14].mxu1 }
 0x159   :  { %v243_v60 = vpop.f32.mrb[15].mxu0  ;;  %v283_v61 = vpop.f32.mrb[15].mxu1  ;;  %v343_v62 = vmul.f32 0.00048828125, %v241_v58  ;;  %v351_v63 = vmul.f32 0.00048828125, %v281_v59 }
 0x15b   :  { %359 = vst [vmem:[#allocation7 + $0x38] sm:$0xff] %v343_v62  ;;  %367 = vst [vmem:[#allocation7 + $0x78] sm:$0xff] %v351_v63 }
 0x15c   :  { %497 = shalt.err (!%p494_p6)
}
 0x15d   :  { %s498_s10 = scalar_lea.hbm %s574_s2, 2048 }
 0x15e   :  { %p499_p7 = scmp.ne.s32.totalorder %s574_s2, %s498_s10  ;;  %p502_p8 = scmp.lt.u32.totalorder %s498_s10, %s574_s2 }
 0x160   :  { %p504_p9 = pnand %p502_p8, %p499_p7 }
 0x162   :  { %507 = shalt.err (!%p504_p9)
}
 0x163   :  { %s519_s15 = smov 128   ;;  %s520_s16 = smov 8  }
 0x164   :  { %379 = dma.vmem_to_hbm [thread:$0]  %s374_s6, 2048, %s574_s2, [#allocation4], %s519_s15, %s519_s15, %s520_s16  }
 0x165   :  { %512 = dma.done.wait [#allocation4], 2048  }
 0x166   :  { %513 = vsyncadd [#allocation4], 4294965248 }
 0x167   :  { %383 = vsyncpa [#allocation3], 1 }
 0x168   :  { %384 = vsyncpa [#allocation6], 1 }
 0x169   :  { %385 = vsyncpa [#allocation4], 1 }

</bundles_post_ra>
